<compile_context>
chip_gen: v7x
topology: tpu7x:2x2x1
jax: 0.10.0
libtpu: 0.0.40
codegen_flags: <defaults>
</compile_context>

<pallas_src>
import jax
import jax.numpy as jnp
from jax.experimental import pallas as pl
from jax.experimental.pallas import tpu as pltpu

_LANE = 128          # vreg lane width
_TILE_R_MAX = 64     # sublane-groups per grid step -> 64 * 128 = 8192 rows/tile
_DIMS = ((6, 4), (4, 2), (2, 1))   # (fan_in, fan_out) per layer


def _sigmoid(z):
    # exp and the approximate reciprocal both land on the otherwise-idle EUP.
    z = jnp.maximum(z, -30.0)          # guard exp overflow (e.g. padded rows)
    return pl.reciprocal(1.0 + jnp.exp(-z), approx=True)


def _mlp_kernel(x_ref, w0_ref, b0_ref, w1_ref, b1_ref, w2_ref, b2_ref, o_ref):
    # x_ref : (6, TILE_R, 128) VMEM block -- feature-major, batch on (sublane, lane)
    # w*_ref: (out, in) f32 in SMEM ; b*_ref: (out,) f32 in SMEM
    # o_ref : (TILE_R, 128) VMEM block -- lane-dense output
    h = [x_ref[i].astype(jnp.float32) for i in range(6)]   # 6 x (TILE_R, 128)

    def layer(w_ref, b_ref, h_in, n_in, n_out):
        outs = []
        for o in range(n_out):
            acc = h_in[0] * w_ref[o, 0]          # SMEM scalar x dense vreg slab
            for i in range(1, n_in):
                acc = acc + h_in[i] * w_ref[o, i]
            outs.append(_sigmoid(acc + b_ref[o]))
        return outs

    h = layer(w0_ref, b0_ref, h, 6, 4)
    h = layer(w1_ref, b1_ref, h, 4, 2)
    y = layer(w2_ref, b2_ref, h, 2, 1)[0]        # (TILE_R, 128)
    o_ref[...] = y.astype(o_ref.dtype)


def logistic_regression_forward(x, params, *, tile_r_max=_TILE_R_MAX):
    """x: (B, 6) float32 or bfloat16. Returns (B, 1) float32 predictions."""
    B, F = x.shape
    assert F == 6, "model expects 6 input features"

    nb = pl.cdiv(B, _LANE)                 # number of 128-row lane groups
    if nb <= tile_r_max:
        tile_r, grid_n = nb, 1             # single step; block == full array
    else:
        tile_r = tile_r_max                # multiple of 8 -> (8,128) aligned
        grid_n = pl.cdiv(nb, tile_r)
    nb_pad = grid_n * tile_r
    b_pad = nb_pad * _LANE

    if b_pad != B:
        x = jnp.pad(x, ((0, b_pad - B), (0, 0)))
    # One host-side transpose: feature-major, batch split into (sublane, lane).
    xt = x.T.reshape(F, nb_pad, _LANE)

    smem = pl.BlockSpec(memory_space=pltpu.MemorySpace.SMEM)
    out2d = pl.pallas_call(
        _mlp_kernel,
        out_shape=jax.ShapeDtypeStruct((nb_pad, _LANE), jnp.float32),
        grid=(grid_n,),
        in_specs=[
            pl.BlockSpec((F, tile_r, _LANE), lambda i: (0, i, 0)),
            smem, smem, smem, smem, smem, smem,
        ],
        out_specs=pl.BlockSpec((tile_r, _LANE), lambda i: (i, 0)),
        compiler_params=pltpu.CompilerParams(
            dimension_semantics=("parallel",)),   # megacore / v7x 2-TC sharding
    )(xt, params["w0"], params["b0"], params["w1"], params["b1"],
      params["w2"], params["b2"])

    return out2d.reshape(b_pad)[:B].reshape(B, 1)


def init_params(key):
    """PyTorch nn.Linear default init: U(-1/sqrt(fan_in), +1/sqrt(fan_in)).
    Weights stored PyTorch-style as (out, in); biases as (out,)."""
    params = {}
    for i, (fin, fout) in enumerate(_DIMS):
        key, kw, kb = jax.random.split(key, 3)
        bound = 1.0 / float(fin) ** 0.5
        params[f"w{i}"] = jax.random.uniform(
            kw, (fout, fin), jnp.float32, minval=-bound, maxval=bound)
        params[f"b{i}"] = jax.random.uniform(
            kb, (fout,), jnp.float32, minval=-bound, maxval=bound)
    return params


def _reference_forward(x, params):
    h = jax.nn.sigmoid(x @ params["w0"].T + params["b0"])
    h = jax.nn.sigmoid(h @ params["w1"].T + params["b1"])
    return jax.nn.sigmoid(h @ params["w2"].T + params["b2"])


if __name__ == "__main__":
    key = jax.random.PRNGKey(0)
    key, kx = jax.random.split(key)
    params = init_params(key)

    # Small batch consistent with the module (6 input features).
    B = 8
    x = jax.random.normal(kx, (B, 6), dtype=jnp.float32)

    y = jax.block_until_ready(logistic_regression_forward(x, params))
    y_ref = _reference_forward(x, params)
    assert y.shape == (B, 1)
    assert jnp.allclose(y, y_ref, atol=5e-3, rtol=5e-3)

    # Also exercise the multi-step (grid > 1) tiled path with batch padding.
    B2 = 9000
    x2 = jax.random.normal(jax.random.PRNGKey(1), (B2, 6), dtype=jnp.float32)
    y2 = jax.block_until_ready(logistic_regression_forward(x2, params))
    y2_ref = _reference_forward(x2, params)
    assert y2.shape == (B2, 1)
    assert jnp.allclose(y2, y2_ref, atol=5e-3, rtol=5e-3)

    print("KERNEL_OK")
</pallas_src>

<mosaic_0001>
module attributes {stable_mosaic.version = 11 : i64} {
  func.func @_mlp_kernel(%arg0: i32, %arg1: memref<6x1x128xf32, #tpu.memory_space<vmem>>, %arg2: memref<4x6xf32, #tpu.memory_space<smem>>, %arg3: memref<4xf32, #tpu.memory_space<smem>>, %arg4: memref<2x4xf32, #tpu.memory_space<smem>>, %arg5: memref<2xf32, #tpu.memory_space<smem>>, %arg6: memref<1x2xf32, #tpu.memory_space<smem>>, %arg7: memref<1xf32, #tpu.memory_space<smem>>, %arg8: memref<1x128xf32, #tpu.memory_space<vmem>>) attributes {dimension_semantics = [#tpu.dimension_semantics<parallel>], iteration_bounds = array<i64: 1>, scalar_prefetch = 0 : i64, scratch_operands = 0 : i64, tpu.core_type = #tpu.core_type<tc>, window_params = [{transform_indices = @transform_0, window_bounds = array<i64: 6, 1, 128>}, {transform_indices = @transform_1, window_bounds = array<i64: 4, 6>}, {transform_indices = @transform_2, window_bounds = array<i64: 4>}, {transform_indices = @transform_3, window_bounds = array<i64: 2, 4>}, {transform_indices = @transform_4, window_bounds = array<i64: 2>}, {transform_indices = @transform_5, window_bounds = array<i64: 1, 2>}, {transform_indices = @transform_6, window_bounds = array<i64: 1>}, {transform_indices = @transform_7, window_bounds = array<i64: 1, 128>}]} {
    %c0 = arith.constant 0 : index
    %c0_0 = arith.constant 0 : index
    %c0_1 = arith.constant 0 : index
    %0 = vector.load %arg1[%c0, %c0_0, %c0_1] : memref<6x1x128xf32, #tpu.memory_space<vmem>>, vector<1x1x128xf32>
    %1 = vector.shape_cast %0 : vector<1x1x128xf32> to vector<1x128xf32>
    %c1 = arith.constant 1 : index
    %c0_2 = arith.constant 0 : index
    %c0_3 = arith.constant 0 : index
    %2 = vector.load %arg1[%c1, %c0_2, %c0_3] : memref<6x1x128xf32, #tpu.memory_space<vmem>>, vector<1x1x128xf32>
    %3 = vector.shape_cast %2 : vector<1x1x128xf32> to vector<1x128xf32>
    %c2 = arith.constant 2 : index
    %c0_4 = arith.constant 0 : index
    %c0_5 = arith.constant 0 : index
    %4 = vector.load %arg1[%c2, %c0_4, %c0_5] : memref<6x1x128xf32, #tpu.memory_space<vmem>>, vector<1x1x128xf32>
    %5 = vector.shape_cast %4 : vector<1x1x128xf32> to vector<1x128xf32>
    %c3 = arith.constant 3 : index
    %c0_6 = arith.constant 0 : index
    %c0_7 = arith.constant 0 : index
    %6 = vector.load %arg1[%c3, %c0_6, %c0_7] : memref<6x1x128xf32, #tpu.memory_space<vmem>>, vector<1x1x128xf32>
    %7 = vector.shape_cast %6 : vector<1x1x128xf32> to vector<1x128xf32>
    %c4 = arith.constant 4 : index
    %c0_8 = arith.constant 0 : index
    %c0_9 = arith.constant 0 : index
    %8 = vector.load %arg1[%c4, %c0_8, %c0_9] : memref<6x1x128xf32, #tpu.memory_space<vmem>>, vector<1x1x128xf32>
    %9 = vector.shape_cast %8 : vector<1x1x128xf32> to vector<1x128xf32>
    %c5 = arith.constant 5 : index
    %c0_10 = arith.constant 0 : index
    %c0_11 = arith.constant 0 : index
    %10 = vector.load %arg1[%c5, %c0_10, %c0_11] : memref<6x1x128xf32, #tpu.memory_space<vmem>>, vector<1x1x128xf32>
    %11 = vector.shape_cast %10 : vector<1x1x128xf32> to vector<1x128xf32>
    %c0_12 = arith.constant 0 : index
    %c0_13 = arith.constant 0 : index
    %12 = memref.load %arg2[%c0_12, %c0_13] : memref<4x6xf32, #tpu.memory_space<smem>>
    %13 = vector.broadcast %12 : f32 to vector<1x128xf32>
    %14 = arith.mulf %1, %13 : vector<1x128xf32>
    %c0_14 = arith.constant 0 : index
    %c1_15 = arith.constant 1 : index
    %15 = memref.load %arg2[%c0_14, %c1_15] : memref<4x6xf32, #tpu.memory_space<smem>>
    %16 = vector.broadcast %15 : f32 to vector<1x128xf32>
    %17 = arith.mulf %3, %16 : vector<1x128xf32>
    %18 = arith.addf %14, %17 : vector<1x128xf32>
    %c0_16 = arith.constant 0 : index
    %c2_17 = arith.constant 2 : index
    %19 = memref.load %arg2[%c0_16, %c2_17] : memref<4x6xf32, #tpu.memory_space<smem>>
    %20 = vector.broadcast %19 : f32 to vector<1x128xf32>
    %21 = arith.mulf %5, %20 : vector<1x128xf32>
    %22 = arith.addf %18, %21 : vector<1x128xf32>
    %c0_18 = arith.constant 0 : index
    %c3_19 = arith.constant 3 : index
    %23 = memref.load %arg2[%c0_18, %c3_19] : memref<4x6xf32, #tpu.memory_space<smem>>
    %24 = vector.broadcast %23 : f32 to vector<1x128xf32>
    %25 = arith.mulf %7, %24 : vector<1x128xf32>
    %26 = arith.addf %22, %25 : vector<1x128xf32>
    %c0_20 = arith.constant 0 : index
    %c4_21 = arith.constant 4 : index
    %27 = memref.load %arg2[%c0_20, %c4_21] : memref<4x6xf32, #tpu.memory_space<smem>>
    %28 = vector.broadcast %27 : f32 to vector<1x128xf32>
    %29 = arith.mulf %9, %28 : vector<1x128xf32>
    %30 = arith.addf %26, %29 : vector<1x128xf32>
    %c0_22 = arith.constant 0 : index
    %c5_23 = arith.constant 5 : index
    %31 = memref.load %arg2[%c0_22, %c5_23] : memref<4x6xf32, #tpu.memory_space<smem>>
    %32 = vector.broadcast %31 : f32 to vector<1x128xf32>
    %33 = arith.mulf %11, %32 : vector<1x128xf32>
    %34 = arith.addf %30, %33 : vector<1x128xf32>
    %c0_24 = arith.constant 0 : index
    %35 = memref.load %arg3[%c0_24] : memref<4xf32, #tpu.memory_space<smem>>
    %36 = vector.broadcast %35 : f32 to vector<1x128xf32>
    %37 = arith.addf %34, %36 : vector<1x128xf32>
    %cst = arith.constant -3.000000e+01 : f32
    %38 = vector.broadcast %cst : f32 to vector<1x128xf32>
    %39 = arith.maximumf %37, %38 : vector<1x128xf32>
    %cst_25 = arith.constant 0.000000e+00 : f32
    %40 = vector.broadcast %cst_25 : f32 to vector<1x128xf32>
    %41 = arith.subf %40, %39 : vector<1x128xf32>
    %42 = math.exp %41 : vector<1x128xf32>
    %cst_26 = arith.constant 1.000000e+00 : f32
    %43 = vector.broadcast %cst_26 : f32 to vector<1x128xf32>
    %44 = arith.addf %43, %42 : vector<1x128xf32>
    %45 = tpu.reciprocal %44 {approx = true} : vector<1x128xf32> -> vector<1x128xf32>
    %c1_27 = arith.constant 1 : index
    %c0_28 = arith.constant 0 : index
    %46 = memref.load %arg2[%c1_27, %c0_28] : memref<4x6xf32, #tpu.memory_space<smem>>
    %47 = vector.broadcast %46 : f32 to vector<1x128xf32>
    %48 = arith.mulf %1, %47 : vector<1x128xf32>
    %c1_29 = arith.constant 1 : index
    %c1_30 = arith.constant 1 : index
    %49 = memref.load %arg2[%c1_29, %c1_30] : memref<4x6xf32, #tpu.memory_space<smem>>
    %50 = vector.broadcast %49 : f32 to vector<1x128xf32>
    %51 = arith.mulf %3, %50 : vector<1x128xf32>
    %52 = arith.addf %48, %51 : vector<1x128xf32>
    %c1_31 = arith.constant 1 : index
    %c2_32 = arith.constant 2 : index
    %53 = memref.load %arg2[%c1_31, %c2_32] : memref<4x6xf32, #tpu.memory_space<smem>>
    %54 = vector.broadcast %53 : f32 to vector<1x128xf32>
    %55 = arith.mulf %5, %54 : vector<1x128xf32>
    %56 = arith.addf %52, %55 : vector<1x128xf32>
    %c1_33 = arith.constant 1 : index
    %c3_34 = arith.constant 3 : index
    %57 = memref.load %arg2[%c1_33, %c3_34] : memref<4x6xf32, #tpu.memory_space<smem>>
    %58 = vector.broadcast %57 : f32 to vector<1x128xf32>
    %59 = arith.mulf %7, %58 : vector<1x128xf32>
    %60 = arith.addf %56, %59 : vector<1x128xf32>
    %c1_35 = arith.constant 1 : index
    %c4_36 = arith.constant 4 : index
    %61 = memref.load %arg2[%c1_35, %c4_36] : memref<4x6xf32, #tpu.memory_space<smem>>
    %62 = vector.broadcast %61 : f32 to vector<1x128xf32>
    %63 = arith.mulf %9, %62 : vector<1x128xf32>
    %64 = arith.addf %60, %63 : vector<1x128xf32>
    %c1_37 = arith.constant 1 : index
    %c5_38 = arith.constant 5 : index
    %65 = memref.load %arg2[%c1_37, %c5_38] : memref<4x6xf32, #tpu.memory_space<smem>>
    %66 = vector.broadcast %65 : f32 to vector<1x128xf32>
    %67 = arith.mulf %11, %66 : vector<1x128xf32>
    %68 = arith.addf %64, %67 : vector<1x128xf32>
    %c1_39 = arith.constant 1 : index
    %69 = memref.load %arg3[%c1_39] : memref<4xf32, #tpu.memory_space<smem>>
    %70 = vector.broadcast %69 : f32 to vector<1x128xf32>
    %71 = arith.addf %68, %70 : vector<1x128xf32>
    %cst_40 = arith.constant -3.000000e+01 : f32
    %72 = vector.broadcast %cst_40 : f32 to vector<1x128xf32>
    %73 = arith.maximumf %71, %72 : vector<1x128xf32>
    %cst_41 = arith.constant 0.000000e+00 : f32
    %74 = vector.broadcast %cst_41 : f32 to vector<1x128xf32>
    %75 = arith.subf %74, %73 : vector<1x128xf32>
    %76 = math.exp %75 : vector<1x128xf32>
    %cst_42 = arith.constant 1.000000e+00 : f32
    %77 = vector.broadcast %cst_42 : f32 to vector<1x128xf32>
    %78 = arith.addf %77, %76 : vector<1x128xf32>
    %79 = tpu.reciprocal %78 {approx = true} : vector<1x128xf32> -> vector<1x128xf32>
    %c2_43 = arith.constant 2 : index
    %c0_44 = arith.constant 0 : index
    %80 = memref.load %arg2[%c2_43, %c0_44] : memref<4x6xf32, #tpu.memory_space<smem>>
    %81 = vector.broadcast %80 : f32 to vector<1x128xf32>
    %82 = arith.mulf %1, %81 : vector<1x128xf32>
    %c2_45 = arith.constant 2 : index
    %c1_46 = arith.constant 1 : index
    %83 = memref.load %arg2[%c2_45, %c1_46] : memref<4x6xf32, #tpu.memory_space<smem>>
    %84 = vector.broadcast %83 : f32 to vector<1x128xf32>
    %85 = arith.mulf %3, %84 : vector<1x128xf32>
    %86 = arith.addf %82, %85 : vector<1x128xf32>
    %c2_47 = arith.constant 2 : index
    %c2_48 = arith.constant 2 : index
    %87 = memref.load %arg2[%c2_47, %c2_48] : memref<4x6xf32, #tpu.memory_space<smem>>
    %88 = vector.broadcast %87 : f32 to vector<1x128xf32>
    %89 = arith.mulf %5, %88 : vector<1x128xf32>
    %90 = arith.addf %86, %89 : vector<1x128xf32>
    %c2_49 = arith.constant 2 : index
    %c3_50 = arith.constant 3 : index
    %91 = memref.load %arg2[%c2_49, %c3_50] : memref<4x6xf32, #tpu.memory_space<smem>>
    %92 = vector.broadcast %91 : f32 to vector<1x128xf32>
    %93 = arith.mulf %7, %92 : vector<1x128xf32>
    %94 = arith.addf %90, %93 : vector<1x128xf32>
    %c2_51 = arith.constant 2 : index
    %c4_52 = arith.constant 4 : index
    %95 = memref.load %arg2[%c2_51, %c4_52] : memref<4x6xf32, #tpu.memory_space<smem>>
    %96 = vector.broadcast %95 : f32 to vector<1x128xf32>
    %97 = arith.mulf %9, %96 : vector<1x128xf32>
    %98 = arith.addf %94, %97 : vector<1x128xf32>
    %c2_53 = arith.constant 2 : index
    %c5_54 = arith.constant 5 : index
    %99 = memref.load %arg2[%c2_53, %c5_54] : memref<4x6xf32, #tpu.memory_space<smem>>
    %100 = vector.broadcast %99 : f32 to vector<1x128xf32>
    %101 = arith.mulf %11, %100 : vector<1x128xf32>
    %102 = arith.addf %98, %101 : vector<1x128xf32>
    %c2_55 = arith.constant 2 : index
    %103 = memref.load %arg3[%c2_55] : memref<4xf32, #tpu.memory_space<smem>>
    %104 = vector.broadcast %103 : f32 to vector<1x128xf32>
    %105 = arith.addf %102, %104 : vector<1x128xf32>
    %cst_56 = arith.constant -3.000000e+01 : f32
    %106 = vector.broadcast %cst_56 : f32 to vector<1x128xf32>
    %107 = arith.maximumf %105, %106 : vector<1x128xf32>
    %cst_57 = arith.constant 0.000000e+00 : f32
    %108 = vector.broadcast %cst_57 : f32 to vector<1x128xf32>
    %109 = arith.subf %108, %107 : vector<1x128xf32>
    %110 = math.exp %109 : vector<1x128xf32>
    %cst_58 = arith.constant 1.000000e+00 : f32
    %111 = vector.broadcast %cst_58 : f32 to vector<1x128xf32>
    %112 = arith.addf %111, %110 : vector<1x128xf32>
    %113 = tpu.reciprocal %112 {approx = true} : vector<1x128xf32> -> vector<1x128xf32>
    %c3_59 = arith.constant 3 : index
    %c0_60 = arith.constant 0 : index
    %114 = memref.load %arg2[%c3_59, %c0_60] : memref<4x6xf32, #tpu.memory_space<smem>>
    %115 = vector.broadcast %114 : f32 to vector<1x128xf32>
    %116 = arith.mulf %1, %115 : vector<1x128xf32>
    %c3_61 = arith.constant 3 : index
    %c1_62 = arith.constant 1 : index
    %117 = memref.load %arg2[%c3_61, %c1_62] : memref<4x6xf32, #tpu.memory_space<smem>>
    %118 = vector.broadcast %117 : f32 to vector<1x128xf32>
    %119 = arith.mulf %3, %118 : vector<1x128xf32>
    %120 = arith.addf %116, %119 : vector<1x128xf32>
    %c3_63 = arith.constant 3 : index
    %c2_64 = arith.constant 2 : index
    %121 = memref.load %arg2[%c3_63, %c2_64] : memref<4x6xf32, #tpu.memory_space<smem>>
    %122 = vector.broadcast %121 : f32 to vector<1x128xf32>
    %123 = arith.mulf %5, %122 : vector<1x128xf32>
    %124 = arith.addf %120, %123 : vector<1x128xf32>
    %c3_65 = arith.constant 3 : index
    %c3_66 = arith.constant 3 : index
    %125 = memref.load %arg2[%c3_65, %c3_66] : memref<4x6xf32, #tpu.memory_space<smem>>
    %126 = vector.broadcast %125 : f32 to vector<1x128xf32>
    %127 = arith.mulf %7, %126 : vector<1x128xf32>
    %128 = arith.addf %124, %127 : vector<1x128xf32>
    %c3_67 = arith.constant 3 : index
    %c4_68 = arith.constant 4 : index
    %129 = memref.load %arg2[%c3_67, %c4_68] : memref<4x6xf32, #tpu.memory_space<smem>>
    %130 = vector.broadcast %129 : f32 to vector<1x128xf32>
    %131 = arith.mulf %9, %130 : vector<1x128xf32>
    %132 = arith.addf %128, %131 : vector<1x128xf32>
    %c3_69 = arith.constant 3 : index
    %c5_70 = arith.constant 5 : index
    %133 = memref.load %arg2[%c3_69, %c5_70] : memref<4x6xf32, #tpu.memory_space<smem>>
    %134 = vector.broadcast %133 : f32 to vector<1x128xf32>
    %135 = arith.mulf %11, %134 : vector<1x128xf32>
    %136 = arith.addf %132, %135 : vector<1x128xf32>
    %c3_71 = arith.constant 3 : index
    %137 = memref.load %arg3[%c3_71] : memref<4xf32, #tpu.memory_space<smem>>
    %138 = vector.broadcast %137 : f32 to vector<1x128xf32>
    %139 = arith.addf %136, %138 : vector<1x128xf32>
    %cst_72 = arith.constant -3.000000e+01 : f32
    %140 = vector.broadcast %cst_72 : f32 to vector<1x128xf32>
    %141 = arith.maximumf %139, %140 : vector<1x128xf32>
    %cst_73 = arith.constant 0.000000e+00 : f32
    %142 = vector.broadcast %cst_73 : f32 to vector<1x128xf32>
    %143 = arith.subf %142, %141 : vector<1x128xf32>
    %144 = math.exp %143 : vector<1x128xf32>
    %cst_74 = arith.constant 1.000000e+00 : f32
    %145 = vector.broadcast %cst_74 : f32 to vector<1x128xf32>
    %146 = arith.addf %145, %144 : vector<1x128xf32>
    %147 = tpu.reciprocal %146 {approx = true} : vector<1x128xf32> -> vector<1x128xf32>
    %c0_75 = arith.constant 0 : index
    %c0_76 = arith.constant 0 : index
    %148 = memref.load %arg4[%c0_75, %c0_76] : memref<2x4xf32, #tpu.memory_space<smem>>
    %149 = vector.broadcast %148 : f32 to vector<1x128xf32>
    %150 = arith.mulf %45, %149 : vector<1x128xf32>
    %c0_77 = arith.constant 0 : index
    %c1_78 = arith.constant 1 : index
    %151 = memref.load %arg4[%c0_77, %c1_78] : memref<2x4xf32, #tpu.memory_space<smem>>
    %152 = vector.broadcast %151 : f32 to vector<1x128xf32>
    %153 = arith.mulf %79, %152 : vector<1x128xf32>
    %154 = arith.addf %150, %153 : vector<1x128xf32>
    %c0_79 = arith.constant 0 : index
    %c2_80 = arith.constant 2 : index
    %155 = memref.load %arg4[%c0_79, %c2_80] : memref<2x4xf32, #tpu.memory_space<smem>>
    %156 = vector.broadcast %155 : f32 to vector<1x128xf32>
    %157 = arith.mulf %113, %156 : vector<1x128xf32>
    %158 = arith.addf %154, %157 : vector<1x128xf32>
    %c0_81 = arith.constant 0 : index
    %c3_82 = arith.constant 3 : index
    %159 = memref.load %arg4[%c0_81, %c3_82] : memref<2x4xf32, #tpu.memory_space<smem>>
    %160 = vector.broadcast %159 : f32 to vector<1x128xf32>
    %161 = arith.mulf %147, %160 : vector<1x128xf32>
    %162 = arith.addf %158, %161 : vector<1x128xf32>
    %c0_83 = arith.constant 0 : index
    %163 = memref.load %arg5[%c0_83] : memref<2xf32, #tpu.memory_space<smem>>
    %164 = vector.broadcast %163 : f32 to vector<1x128xf32>
    %165 = arith.addf %162, %164 : vector<1x128xf32>
    %cst_84 = arith.constant -3.000000e+01 : f32
    %166 = vector.broadcast %cst_84 : f32 to vector<1x128xf32>
    %167 = arith.maximumf %165, %166 : vector<1x128xf32>
    %cst_85 = arith.constant 0.000000e+00 : f32
    %168 = vector.broadcast %cst_85 : f32 to vector<1x128xf32>
    %169 = arith.subf %168, %167 : vector<1x128xf32>
    %170 = math.exp %169 : vector<1x128xf32>
    %cst_86 = arith.constant 1.000000e+00 : f32
    %171 = vector.broadcast %cst_86 : f32 to vector<1x128xf32>
    %172 = arith.addf %171, %170 : vector<1x128xf32>
    %173 = tpu.reciprocal %172 {approx = true} : vector<1x128xf32> -> vector<1x128xf32>
    %c1_87 = arith.constant 1 : index
    %c0_88 = arith.constant 0 : index
    %174 = memref.load %arg4[%c1_87, %c0_88] : memref<2x4xf32, #tpu.memory_space<smem>>
    %175 = vector.broadcast %174 : f32 to vector<1x128xf32>
    %176 = arith.mulf %45, %175 : vector<1x128xf32>
    %c1_89 = arith.constant 1 : index
    %c1_90 = arith.constant 1 : index
    %177 = memref.load %arg4[%c1_89, %c1_90] : memref<2x4xf32, #tpu.memory_space<smem>>
    %178 = vector.broadcast %177 : f32 to vector<1x128xf32>
    %179 = arith.mulf %79, %178 : vector<1x128xf32>
    %180 = arith.addf %176, %179 : vector<1x128xf32>
    %c1_91 = arith.constant 1 : index
    %c2_92 = arith.constant 2 : index
    %181 = memref.load %arg4[%c1_91, %c2_92] : memref<2x4xf32, #tpu.memory_space<smem>>
    %182 = vector.broadcast %181 : f32 to vector<1x128xf32>
    %183 = arith.mulf %113, %182 : vector<1x128xf32>
    %184 = arith.addf %180, %183 : vector<1x128xf32>
    %c1_93 = arith.constant 1 : index
    %c3_94 = arith.constant 3 : index
    %185 = memref.load %arg4[%c1_93, %c3_94] : memref<2x4xf32, #tpu.memory_space<smem>>
    %186 = vector.broadcast %185 : f32 to vector<1x128xf32>
    %187 = arith.mulf %147, %186 : vector<1x128xf32>
    %188 = arith.addf %184, %187 : vector<1x128xf32>
    %c1_95 = arith.constant 1 : index
    %189 = memref.load %arg5[%c1_95] : memref<2xf32, #tpu.memory_space<smem>>
    %190 = vector.broadcast %189 : f32 to vector<1x128xf32>
    %191 = arith.addf %188, %190 : vector<1x128xf32>
    %cst_96 = arith.constant -3.000000e+01 : f32
    %192 = vector.broadcast %cst_96 : f32 to vector<1x128xf32>
    %193 = arith.maximumf %191, %192 : vector<1x128xf32>
    %cst_97 = arith.constant 0.000000e+00 : f32
    %194 = vector.broadcast %cst_97 : f32 to vector<1x128xf32>
    %195 = arith.subf %194, %193 : vector<1x128xf32>
    %196 = math.exp %195 : vector<1x128xf32>
    %cst_98 = arith.constant 1.000000e+00 : f32
    %197 = vector.broadcast %cst_98 : f32 to vector<1x128xf32>
    %198 = arith.addf %197, %196 : vector<1x128xf32>
    %199 = tpu.reciprocal %198 {approx = true} : vector<1x128xf32> -> vector<1x128xf32>
    %c0_99 = arith.constant 0 : index
    %c0_100 = arith.constant 0 : index
    %200 = memref.load %arg6[%c0_99, %c0_100] : memref<1x2xf32, #tpu.memory_space<smem>>
    %201 = vector.broadcast %200 : f32 to vector<1x128xf32>
    %202 = arith.mulf %173, %201 : vector<1x128xf32>
    %c0_101 = arith.constant 0 : index
    %c1_102 = arith.constant 1 : index
    %203 = memref.load %arg6[%c0_101, %c1_102] : memref<1x2xf32, #tpu.memory_space<smem>>
    %204 = vector.broadcast %203 : f32 to vector<1x128xf32>
    %205 = arith.mulf %199, %204 : vector<1x128xf32>
    %206 = arith.addf %202, %205 : vector<1x128xf32>
    %c0_103 = arith.constant 0 : index
    %207 = memref.load %arg7[%c0_103] : memref<1xf32, #tpu.memory_space<smem>>
    %208 = vector.broadcast %207 : f32 to vector<1x128xf32>
    %209 = arith.addf %206, %208 : vector<1x128xf32>
    %cst_104 = arith.constant -3.000000e+01 : f32
    %210 = vector.broadcast %cst_104 : f32 to vector<1x128xf32>
    %211 = arith.maximumf %209, %210 : vector<1x128xf32>
    %cst_105 = arith.constant 0.000000e+00 : f32
    %212 = vector.broadcast %cst_105 : f32 to vector<1x128xf32>
    %213 = arith.subf %212, %211 : vector<1x128xf32>
    %214 = math.exp %213 : vector<1x128xf32>
    %cst_106 = arith.constant 1.000000e+00 : f32
    %215 = vector.broadcast %cst_106 : f32 to vector<1x128xf32>
    %216 = arith.addf %215, %214 : vector<1x128xf32>
    %217 = tpu.reciprocal %216 {approx = true} : vector<1x128xf32> -> vector<1x128xf32>
    %c0_107 = arith.constant 0 : index
    %c0_108 = arith.constant 0 : index
    %218 = vector.load %arg8[%c0_107, %c0_108] : memref<1x128xf32, #tpu.memory_space<vmem>>, vector<1x128xf32>
    tpu.vector_store %arg8[%c0_107, %c0_108], %217 {strides = array<i32>} : memref<1x128xf32, #tpu.memory_space<vmem>>, vector<1x128xf32>,
    return
  }
  func.func @transform_0(%arg0: i32) -> (i32, i32, i32) {
    %c0_i32 = arith.constant 0 : i32
    %c0_i32_0 = arith.constant 0 : i32
    %c0_i32_1 = arith.constant 0 : i32
    return %c0_i32, %arg0, %c0_i32_0 : i32, i32, i32
  }
  func.func @transform_1(%arg0: i32) -> (i32, i32) {
    %c0_i32 = arith.constant 0 : i32
    %c0_i32_0 = arith.constant 0 : i32
    %c0_i32_1 = arith.constant 0 : i32
    return %c0_i32, %c0_i32_0 : i32, i32
  }
  func.func @transform_2(%arg0: i32) -> i32 {
    %c0_i32 = arith.constant 0 : i32
    %c0_i32_0 = arith.constant 0 : i32
    return %c0_i32 : i32
  }
  func.func @transform_3(%arg0: i32) -> (i32, i32) {
    %c0_i32 = arith.constant 0 : i32
    %c0_i32_0 = arith.constant 0 : i32
    %c0_i32_1 = arith.constant 0 : i32
    return %c0_i32, %c0_i32_0 : i32, i32
  }
  func.func @transform_4(%arg0: i32) -> i32 {
    %c0_i32 = arith.constant 0 : i32
    %c0_i32_0 = arith.constant 0 : i32
    return %c0_i32 : i32
  }
  func.func @transform_5(%arg0: i32) -> (i32, i32) {
    %c0_i32 = arith.constant 0 : i32
    %c0_i32_0 = arith.constant 0 : i32
    %c0_i32_1 = arith.constant 0 : i32
    return %c0_i32, %c0_i32_0 : i32, i32
  }
  func.func @transform_6(%arg0: i32) -> i32 {
    %c0_i32 = arith.constant 0 : i32
    %c0_i32_0 = arith.constant 0 : i32
    return %c0_i32 : i32
  }
  func.func @transform_7(%arg0: i32) -> (i32, i32) {
    %c0_i32 = arith.constant 0 : i32
    %c0_i32_0 = arith.constant 0 : i32
    return %arg0, %c0_i32 : i32, i32
  }
}

</mosaic_0001>

<bundles_post_ra>
// kernel: tpu_custom_call.1
= control target key start
LH: loop header
LB: loop body
LE: loop exit
PB: predicated region body
PF: predicated region fallthrough
CT: control target
= control target key end

     0   :  { %13 = vsyncpa [#allocation4], 0  ;;  %s702_s0 = inlined_call_operand.hbm [shape: f32[6,1,128], index: 0, kind: input, shape index: {}]   ;;  %s703_s1 = inlined_call_operand.vmem [shape: f32[4,6], index: 1, kind: input, shape index: {}]   ;;  %s704_s2 = inlined_call_operand.vmem [shape: f32[4], index: 2, kind: input, shape index: {}]   ;;  %s705_s3 = inlined_call_operand.vmem [shape: f32[2,4], index: 3, kind: input, shape index: {}]   ;;  %s706_s4 = inlined_call_operand.vmem [shape: f32[2], index: 4, kind: input, shape index: {}]   ;;  %s707_s5 = inlined_call_operand.vmem [shape: f32[1,2], index: 5, kind: input, shape index: {}]   ;;  %s708_s6 = inlined_call_operand.<no memory space> [shape: f32[1], index: 6, kind: input, shape index: {}]   ;;  %s709_s7 = inlined_call_operand.hbm [shape: f32[1,128], index: 7, kind: output, shape index: {}]  }
   0x1   :  { %14 = vsyncpa [#allocation6], 0 }
   0x2   :  { %15 = vsyncpa [#allocation9], 0 }
   0x3   :  { %16 = vsyncpa [#allocation12], 0  ;;  %s46_s26 = sshll.u32 %s704_s2, 4  ;;  %s47_s26 = int_to_ptr.vmem [resolvable:$true] %s46_s26 }
   0x4   :  { %17 = vsyncpa [#allocation5], 0  ;;  %s66_s29 = sshll.u32 %s706_s4, 4  ;;  %s395_s30 = scalar_lea.vmem %s47_s26, 16  ;;  %s67_s29 = int_to_ptr.vmem [resolvable:$true] %s66_s29 }
   0x5   :  { %p396_p0 = scmp.ne.s32.totalorder %s47_s26, %s395_s30  ;;  %p400_p1 = scmp.lt.s32.totalorder %s47_s26, %s47_s26 }
   0x6   :  { %p401_p2 = scmp.lt.s32.totalorder %s395_s30, %s395_s30 }
   0x8   :  { %p402_p3 = por %p401_p2, %p400_p1 }
   0xa   :  { %p403_p4 = pnand %p402_p3, %p396_p0 }
   0xc   :  { %406 = shalt.err (!%p403_p4)
}
   0xd   :  { %s509_s8 = smov [#allocation8]   ;;  %s407_s9 = scalar_lea.vmem %s67_s29, 16 }
   0xe   :  { %49 = dma.vmem_to_smem %s47_s26, 16, %s509_s8, [#allocation9]  }
   0xf   :  { %p408_p5 = scmp.ne.s32.totalorder %s67_s29, %s407_s9  ;;  %p412_p6 = scmp.lt.s32.totalorder %s67_s29, %s67_s29 }
  0x10   :  { %p413_p7 = scmp.lt.s32.totalorder %s407_s9, %s407_s9 }
  0x12   :  { %p414_p8 = por %p413_p7, %p412_p6 }
  0x14   :  { %p415_p9 = pnand %p414_p8, %p408_p5 }
  0x16   :  { %418 = shalt.err (!%p415_p9)
}
  0x17   :  { %s510_s2 = smov [#allocation11]   ;;  %s511_s4 = smov [#allocation3]  }
  0x18   :  { %69 = dma.vmem_to_smem %s67_s29, 16, %s510_s2, [#allocation12]  }
  0x19   :  { %s23_s10 = sshll.u32 %s511_s4, 4  ;;  %s36_s13 = sshll.u32 %s703_s1, 4  ;;  %s24_s10 = int_to_ptr.vmem [resolvable:$true] %s23_s10  ;;  %s37_s13 = int_to_ptr.vmem [resolvable:$true] %s36_s13 }
  0x1a   :  { %s419_s16 = scalar_lea.hbm %s702_s0, 96 }
  0x1b   :  { %p420_p10 = scmp.ne.s32.totalorder %s702_s0, %s419_s16  ;;  %p423_p11 = scmp.lt.u32.totalorder %s419_s16, %s702_s0 }
  0x1d   :  { %p425_p12 = pnand %p423_p11, %p420_p10 }
  0x1f   :  { %428 = shalt.err (!%p425_p12)
}
  0x20   :  { %s429_s21 = scalar_lea.vmem %s24_s10, 96  ;;  %p434_p0 = scmp.lt.s32.totalorder %s24_s10, %s24_s10 }
  0x21   :  { %p430_p13 = scmp.ne.s32.totalorder %s24_s10, %s429_s21  ;;  %p435_p1 = scmp.lt.s32.totalorder %s429_s21, %s429_s21 }
  0x23   :  { %p436_p2 = por %p435_p1, %p434_p0 }
  0x25   :  { %p437_p3 = pnand %p436_p2, %p430_p13 }
  0x27   :  { %440 = shalt.err (!%p437_p3)
}
  0x28   :  { %s512_s1 = smov 16   ;;  %s513_s22 = smov 1  }
  0x29   :  { %29 = dma.hbm_to_vmem [thread:$0]  %s702_s0, 96, %s24_s10, [#allocation4], %s512_s1, %s512_s1, %s513_s22  }
  0x2a   :  { %s441_s25 = scalar_lea.vmem %s37_s13, 64  ;;  %p446_p5 = scmp.lt.s32.totalorder %s37_s13, %s37_s13 }
  0x2b   :  { %p442_p4 = scmp.ne.s32.totalorder %s37_s13, %s441_s25  ;;  %p447_p6 = scmp.lt.s32.totalorder %s441_s25, %s441_s25 }
  0x2d   :  { %p448_p7 = por %p447_p6, %p446_p5 }
  0x2f   :  { %p449_p8 = pnand %p448_p7, %p442_p4 }
  0x31   :  { %452 = shalt.err (!%p449_p8)
}
  0x32   :  { %s514_s26 = smov [#allocation7]   ;;  %s56_s29 = sshll.u32 %s705_s3, 4  ;;  %s57_s29 = int_to_ptr.vmem [resolvable:$true] %s56_s29 }
  0x33   :  { %39 = dma.vmem_to_smem %s37_s13, 64, %s514_s26, [#allocation6]  }
  0x34   :  { %s76_s9 = sshll.u32 %s707_s5, 4  ;;  %s453_s0 = scalar_lea.vmem %s57_s29, 32  ;;  %s77_s9 = int_to_ptr.vmem [resolvable:$true] %s76_s9 }
  0x35   :  { %p454_p9 = scmp.ne.s32.totalorder %s57_s29, %s453_s0  ;;  %p458_p10 = scmp.lt.s32.totalorder %s57_s29, %s57_s29 }
  0x36   :  { %p459_p11 = scmp.lt.s32.totalorder %s453_s0, %s453_s0 }
  0x38   :  { %p460_p12 = por %p459_p11, %p458_p10 }
  0x3a   :  { %p461_p13 = pnand %p460_p12, %p454_p9 }
  0x3c   :  { %464 = shalt.err (!%p461_p13)
}
  0x3d   :  { %s515_s2 = smov [#allocation10]   ;;  %s465_s4 = scalar_lea.vmem %s77_s9, 16 }
  0x3e   :  { %59 = dma.vmem_to_smem %s57_s29, 32, %s515_s2, [#allocation9]  }
  0x3f   :  { %p466_p0 = scmp.ne.s32.totalorder %s77_s9, %s465_s4  ;;  %p470_p1 = scmp.lt.s32.totalorder %s77_s9, %s77_s9 }
  0x40   :  { %p471_p2 = scmp.lt.s32.totalorder %s465_s4, %s465_s4 }
  0x42   :  { %p472_p3 = por %p471_p2, %p470_p1 }
  0x44   :  { %p473_p4 = pnand %p472_p3, %p466_p0 }
  0x46   :  { %476 = shalt.err (!%p473_p4)
}
  0x47   :  { %s516_s3 = smov [#allocation13]  }
  0x48   :  { %79 = dma.vmem_to_smem %s77_s9, 16, %s516_s3, [#allocation12]  }
  0x49   :  { %499 = dma.done.wait [#allocation4], 96  }
  0x4a   :  { %500 = vsyncadd [#allocation4], 4294967200 }
  0x4b   :  { %501 = dma.done.wait [#allocation6], 64  }
  0x4c   :  { %502 = vsyncadd [#allocation6], 4294967232 }
  0x4d   :  { %503 = dma.done.wait [#allocation9], 48  }
  0x4e   :  { %504 = vsyncadd [#allocation9], 4294967248 }
  0x4f   :  { %505 = dma.done.wait [#allocation12], 32  }
  0x50   :  { %506 = vsyncadd [#allocation12], 4294967264 }
  0x51   :  { %100 = sfence }
  0x52   :  { %s112_s5 = sld [smem:[#allocation7]]  ;;  %s323_s10 = sld [smem:[#allocation7 + $0x1]]  ;;  %v587_v0 = vld [vmem:[#allocation3] sm:$0x1]  ;;  %v593_v1 = vld [vmem:[#allocation3 + $0x1] sm:$0x1] }
  0x53   :  { %s324_s11 = sld [smem:[#allocation7 + $0x2]]  ;;  %s325_s12 = sld [smem:[#allocation7 + $0x3]]  ;;  %v599_v2 = vld [vmem:[#allocation3 + $0x2] sm:$0x1]  ;;  %v605_v3 = vld [vmem:[#allocation3 + $0x3] sm:$0x1] }
  0x54   :  { %s326_s13 = sld [smem:[#allocation7 + $0x4]]  ;;  %s585_s14 = sld [smem:[#allocation7 + $0x5]]  ;;  %v607_v4 = vld [vmem:[#allocation3 + $0x4] sm:$0x1]  ;;  %v611_v7 = vld [vmem:[#allocation3 + $0x5] sm:$0x1] }
  0x55   :  { %s589_s15 = sld [smem:[#allocation8]]  ;;  %s595_s17 = sld [smem:[#allocation7 + $0x81]] }
  0x56   :  { %s591_s16 = sld [smem:[#allocation7 + $0x80]]  ;;  %s597_s18 = sld [smem:[#allocation7 + $0x82]] }
  0x57   :  { %s601_s19 = sld [smem:[#allocation7 + $0x83]]  ;;  %s603_s20 = sld [smem:[#allocation7 + $0x84]] }
  0x58   :  { %v113_v5 = vstv %s112_s5  ;;  %v116_v6 = vstv %s323_s10  ;;  %s609_s21 = sld [smem:[#allocation7 + $0x85]]  ;;  %s615_s1 = sld [smem:[#allocation7 + $0x100]] }
  0x59   :  { %v114_v8 = vmul.f32 %v113_v5, %v587_v0  ;;  %v117_v9 = vmul.f32 %v116_v6, %v593_v1  ;;  %v120_v10 = vstv %s324_s11  ;;  %v124_v11 = vstv %s325_s12  ;;  %s617_s22 = sld [smem:[#allocation7 + $0x101]]  ;;  %s621_s23 = sld [smem:[#allocation7 + $0x102]] }
  0x5a   :  { %v121_v12 = vmul.f32 %v120_v10, %v599_v2  ;;  %v128_v13 = vstv %s326_s13  ;;  %v132_v14 = vstv %s585_s14  ;;  %s623_s24 = sld [smem:[#allocation7 + $0x103]]  ;;  %v125_v16 = vmul.f32 %v124_v11, %v605_v3  ;;  %s627_s25 = sld [smem:[#allocation7 + $0x104]] }
  0x5b   :  { %v118_v15 = vadd.f32 %v117_v9, %v114_v8  ;;  %v129_v17 = vmul.f32 %v128_v13, %v607_v4  ;;  %s629_s26 = sld [smem:[#allocation7 + $0x105]]  ;;  %v133_v18 = vmul.f32 %v132_v14, %v611_v7  ;;  %v148_v20 = vstv %s595_s17  ;;  %s635_s27 = sld [smem:[#allocation8 + $0x1]] }
  0x5c   :  { %v145_v19 = vstv %s591_s16  ;;  %v152_v21 = vstv %s597_s18  ;;  %s637_s28 = sld [smem:[#allocation7 + $0x180]]  ;;  %v149_v24 = vmul.f32 %v148_v20, %v593_v1  ;;  %s642_s29 = sld [smem:[#allocation7 + $0x181]]  ;;  %v136_v26 = vstv %s589_s15 }
  0x5d   :  { %v122_v22 = vadd.f32 %v121_v12, %v118_v15  ;;  %v146_v23 = vmul.f32 %v145_v19, %v587_v0  ;;  %v153_v25 = vmul.f32 %v152_v21, %v599_v2  ;;  %s644_s30 = sld [smem:[#allocation7 + $0x182]]  ;;  %v156_v27 = vstv %s601_s19  ;;  %s650_s8 = sld [smem:[#allocation7 + $0x183]] }
  0x5e   :  { %v160_v28 = vstv %s603_s20  ;;  %v164_v29 = vstv %s609_s21  ;;  %s652_s9 = sld [smem:[#allocation7 + $0x184]]  ;;  %v157_v32 = vmul.f32 %v156_v27, %v605_v3  ;;  %v177_v35 = vstv %s615_s1  ;;  %s660_s0 = sld [smem:[#allocation7 + $0x185]] }
  0x5f   :  { %v126_v30 = vadd.f32 %v125_v16, %v122_v22  ;;  %v150_v31 = vadd.f32 %v149_v24, %v146_v23  ;;  %v161_v33 = vmul.f32 %v160_v28, %v607_v4  ;;  %v165_v34 = vmul.f32 %v164_v29, %v611_v7  ;;  %s668_s2 = sld [smem:[#allocation8 + $0x2]]  ;;  %s348_s4 = sld [smem:[#allocation8 + $0x3]] }
  0x60   :  { %v180_v36 = vstv %s617_s22  ;;  %v184_v37 = vstv %s621_s23  ;;  %v178_v40 = vmul.f32 %v177_v35, %v587_v0  ;;  %v188_v43 = vstv %s623_s24  ;;  %s240_s3 = sld [smem:[#allocation10]]  ;;  %s349_s5 = sld [smem:[#allocation10 + $0x1]] }
  0x61   :  { %v130_v38 = vadd.f32 %v129_v17, %v126_v30  ;;  %v154_v39 = vadd.f32 %v153_v25, %v150_v31  ;;  %v181_v41 = vmul.f32 %v180_v36, %v593_v1  ;;  %v185_v42 = vmul.f32 %v184_v37, %v599_v2  ;;  %s352_s10 = sld [smem:[#allocation10 + $0x80]]  ;;  %s353_s11 = sld [smem:[#allocation10 + $0x81]] }
  0x62   :  { %v192_v44 = vstv %s627_s25  ;;  %v196_v45 = vstv %s629_s26  ;;  %v189_v49 = vmul.f32 %v188_v43, %v605_v3  ;;  %v168_v50 = vstv %s635_s27  ;;  %s350_s12 = sld [smem:[#allocation10 + $0x2]]  ;;  %s351_s14 = sld [smem:[#allocation10 + $0x3]] }
  0x63   :  { %v134_v46 = vadd.f32 %v133_v18, %v130_v38  ;;  %v158_v47 = vadd.f32 %v157_v32, %v154_v39  ;;  %v182_v48 = vadd.f32 %v181_v41, %v178_v40  ;;  %v193_v51 = vmul.f32 %v192_v44, %v607_v4  ;;  %s354_s13 = sld [smem:[#allocation10 + $0x82]]  ;;  %s355_s15 = sld [smem:[#allocation10 + $0x83]] }
  0x64   :  { %v197_v52 = vmul.f32 %v196_v45, %v611_v7  ;;  %v209_v53 = vstv %s637_s28  ;;  %v212_v58 = vstv %s642_s29  ;;  %v216_v59 = vstv %s644_s30  ;;  %s255_s16 = sld [smem:[#allocation11]]  ;;  %s356_s17 = sld [smem:[#allocation11 + $0x1]] }
  0x65   :  { %v137_v54 = vadd.f32 %v136_v26, %v134_v46  ;;  %v162_v55 = vadd.f32 %v161_v33, %v158_v47  ;;  %v186_v56 = vadd.f32 %v185_v42, %v182_v48  ;;  %v210_v57 = vmul.f32 %v209_v53, %v587_v0  ;;  %s288_s18 = sld [smem:[#allocation13]]  ;;  %s357_s19 = sld [smem:[#allocation13 + $0x1]] }
  0x66   :  { %v220_v60 = vstv %s650_s8  ;;  %v224_v61 = vstv %s652_s9  ;;  %v213_v6 = vmul.f32 %v212_v58, %v593_v1  ;;  %v217_v8 = vmul.f32 %v216_v59, %v599_v2  ;;  %s517_s1 = smov [#allocation14]  }
  0x67   :  { %v138_v62 = vmax.f32 %v137_v54, -30.0  ;;  %v166_v63 = vadd.f32 %v165_v34, %v162_v55  ;;  %v190_v5 = vadd.f32 %v189_v49, %v186_v56  ;;  %v221_v9 = vmul.f32 %v220_v60, %v605_v3  ;;  %s311_s22 = sshll.u32 %s517_s1, 4  ;;  %s312_s22 = int_to_ptr.vmem [resolvable:$true] %s311_s22 }
  0x68   :  { %v228_v10 = vstv %s660_s0  ;;  %v214_v0 = vadd.f32 %v213_v6, %v210_v57  ;;  %v200_v14 = vstv %s668_s2  ;;  %v225_v15 = vmul.f32 %v224_v61, %v607_v4  ;;  %s477_s23 = scalar_lea.vmem %s312_s22, 16  ;;  %s481_s24 = scalar_lea.vmem %s312_s22, 32 }
  0x69   :  { %v139_v11 = vsub.f32 0.0, %v138_v62  ;;  %v169_v12 = vadd.f32 %v168_v50, %v166_v63  ;;  %v194_v13 = vadd.f32 %v193_v51, %v190_v5  ;;  %v229_v20 = vmul.f32 %v228_v10, %v611_v7  ;;  %p478_p5 = scmp.ne.s32.totalorder %s312_s22, %s477_s23  ;;  %p482_p6 = scmp.lt.s32.totalorder %s312_s22, %s312_s22 }
  0x6a   :  { %v218_v19 = vadd.f32 %v217_v8, %v214_v0  ;;  %v232_v24 = vstv %s348_s4  ;;  %v241_v37 = vstv %s240_s3  ;;  %v244_v40 = vstv %s349_s5  ;;  %p483_p7 = scmp.lt.s32.totalorder %s481_s24, %s477_s23 }
  0x6b   :  { %v140_v16 = vmul.f32 1.442695, %v139_v11  ;;  %v170_v17 = vmax.f32 %v169_v12, -30.0  ;;  %v198_v18 = vadd.f32 %v197_v52, %v194_v13  ;;  %v265_v41 = vstv %s352_s10 }
  0x6c   :  { %v222_v21 = vadd.f32 %v221_v9, %v218_v19  ;;  %v268_v42 = vstv %s353_s11  ;;  %v248_v48 = vstv %s350_s12  ;;  %v272_v49 = vstv %s354_s13  ;;  %p484_p8 = por %p483_p7, %p482_p6 }
  0x6d   :  { %367 = vpow2.f32 %v140_v16  ;;  %v171_v1 = vsub.f32 0.0, %v170_v17  ;;  %v201_v2 = vadd.f32 %v200_v14, %v198_v18  ;;  %v252_v55 = vstv %s351_s14 }
  0x6e   :  { %v226_v23 = vadd.f32 %v225_v15, %v222_v21  ;;  %v276_v56 = vstv %s355_s15  ;;  %v256_v62 = vstv %s255_s16  ;;  %v280_v63 = vstv %s356_s17  ;;  %p485_p9 = pnand %p484_p8, %p478_p5 }
  0x6f   :  { %v172_v3 = vmul.f32 1.442695, %v171_v1  ;;  %v202_v22 = vmax.f32 %v201_v2, -30.0  ;;  %v289_v19 = vstv %s288_s18 }
  0x70   :  { %v230_v26 = vadd.f32 %v229_v20, %v226_v23  ;;  %v292_v20 = vstv %s357_s19 }
  0x71   :  { %369 = vpow2.f32 %v172_v3  ;;  %v203_v25 = vsub.f32 0.0, %v202_v22  ;;  %v296_v22 = vstv %s708_s6 }
  0x72   :  { %v233_v28 = vadd.f32 %v232_v24, %v230_v26 }
  0x73   :  { %v204_v27 = vmul.f32 1.442695, %v203_v25 }
  0x74   :  { %v234_v4 = vmax.f32 %v233_v28, -30.0 }
  0x75   :  { %371 = vpow2.f32 %v204_v27 }
  0x76   :  { %v235_v30 = vsub.f32 0.0, %v234_v4 }
  0x77   :  { %v368_v29 = vpop.eup %367 }
  0x78   :  { %v142_v31 = vadd.f32 1.0, %v368_v29  ;;  %v236_v32 = vmul.f32 1.442695, %v235_v30 }
  0x7a   :  { %373 = vpow2.f32 %v236_v32 }
  0x7b   :  { %v370_v7 = vpop.eup %369  ;;  %375 = vrcp.f32 %v142_v31 }
  0x7c   :  { %v174_v33 = vadd.f32 1.0, %v370_v7 }
  0x7e   :  { %377 = vrcp.f32 %v174_v33 }
  0x7f   :  { %v372_v34 = vpop.eup %371 }
  0x80   :  { %v206_v35 = vadd.f32 1.0, %v372_v34 }
  0x82   :  { %379 = vrcp.f32 %v206_v35 }
  0x84   :  { %v374_v36 = vpop.eup %373 }
  0x85   :  { %v376_v38 = vpop.eup %375  ;;  %v238_v39 = vadd.f32 1.0, %v374_v36 }
  0x86   :  { %v242_v44 = vmul.f32 %v376_v38, %v241_v37  ;;  %v266_v46 = vmul.f32 %v376_v38, %v265_v41 }
  0x87   :  { %381 = vrcp.f32 %v238_v39 }
  0x88   :  { %v378_v43 = vpop.eup %377 }
  0x89   :  { %v245_v45 = vmul.f32 %v378_v43, %v244_v40  ;;  %v269_v47 = vmul.f32 %v378_v43, %v268_v42 }
  0x8b   :  { %v246_v51 = vadd.f32 %v245_v45, %v242_v44  ;;  %v270_v53 = vadd.f32 %v269_v47, %v266_v46 }
  0x8c   :  { %v380_v50 = vpop.eup %379 }
  0x8d   :  { %v249_v52 = vmul.f32 %v380_v50, %v248_v48  ;;  %v273_v54 = vmul.f32 %v380_v50, %v272_v49 }
  0x8f   :  { %v250_v57 = vadd.f32 %v249_v52, %v246_v51  ;;  %v274_v58 = vadd.f32 %v273_v54, %v270_v53 }
  0x91   :  { %v382_v59 = vpop.eup %381 }
  0x92   :  { %v253_v60 = vmul.f32 %v382_v59, %v252_v55  ;;  %v277_v61 = vmul.f32 %v382_v59, %v276_v56 }
  0x94   :  { %v254_v5 = vadd.f32 %v253_v60, %v250_v57  ;;  %v278_v6 = vadd.f32 %v277_v61, %v274_v58 }
  0x96   :  { %v257_v8 = vadd.f32 %v256_v62, %v254_v5  ;;  %v281_v9 = vadd.f32 %v280_v63, %v278_v6 }
  0x98   :  { %v258_v10 = vmax.f32 %v257_v8, -30.0  ;;  %v282_v11 = vmax.f32 %v281_v9, -30.0 }
  0x9a   :  { %v259_v12 = vsub.f32 0.0, %v258_v10  ;;  %v283_v13 = vsub.f32 0.0, %v282_v11 }
  0x9c   :  { %v260_v0 = vmul.f32 1.442695, %v259_v12  ;;  %v284_v14 = vmul.f32 1.442695, %v283_v13 }
  0x9e   :  { %383 = vpow2.f32 %v260_v0 }
  0x9f   :  { %385 = vpow2.f32 %v284_v14 }
  0xa8   :  { %v384_v15 = vpop.eup %383 }
  0xa9   :  { %v386_v16 = vpop.eup %385  ;;  %v262_v17 = vadd.f32 1.0, %v384_v15 }
  0xaa   :  { %v286_v18 = vadd.f32 1.0, %v386_v16 }
  0xab   :  { %387 = vrcp.f32 %v262_v17 }
  0xac   :  { %389 = vrcp.f32 %v286_v18 }
  0xb5   :  { %v388_v1 = vpop.eup %387 }
  0xb6   :  { %v390_v2 = vpop.eup %389  ;;  %v290_v21 = vmul.f32 %v388_v1, %v289_v19 }
  0xb7   :  { %v293_v3 = vmul.f32 %v390_v2, %v292_v20 }
  0xb9   :  { %v294_v23 = vadd.f32 %v293_v3, %v290_v21 }
  0xbb   :  { %v297_v24 = vadd.f32 %v296_v22, %v294_v23 }
  0xbd   :  { %v298_v25 = vmax.f32 %v297_v24, -30.0 }
  0xbf   :  { %v299_v26 = vsub.f32 0.0, %v298_v25 }
  0xc1   :  { %v300_v27 = vmul.f32 1.442695, %v299_v26 }
  0xc3   :  { %391 = vpow2.f32 %v300_v27 }
  0xcd   :  { %v392_v28 = vpop.eup %391 }
  0xce   :  { %v302_v4 = vadd.f32 1.0, %v392_v28 }
  0xd0   :  { %393 = vrcp.f32 %v302_v4 }
  0xda   :  { %v394_v29 = vpop.eup %393 }
  0xdb   :  { %304 = vst [vmem:[#allocation14] sm:$0x1] %v394_v29 }
  0xdc   :  { %488 = shalt.err (!%p485_p9)
}
  0xdd   :  { %s489_s26 = scalar_lea.hbm %s709_s7, 16 }
  0xde   :  { %p490_p10 = scmp.ne.s32.totalorder %s709_s7, %s489_s26  ;;  %p493_p11 = scmp.lt.u32.totalorder %s489_s26, %s709_s7 }
  0xe0   :  { %p495_p12 = pnand %p493_p11, %p490_p10 }
  0xe2   :  { %498 = shalt.err (!%p495_p12)
}
  0xe3   :  { %314 = dma.vmem_to_hbm [thread:$0]  %s312_s22, 16, %s709_s7, [#allocation5]  }
  0xe4   :  { %507 = dma.done.wait [#allocation5], 16  }
  0xe5   :  { %508 = vsyncadd [#allocation5], 4294967280 }
  0xe6   :  { %318 = vsyncpa [#allocation4], 1 }
  0xe7   :  { %319 = vsyncpa [#allocation5], 1 }
  0xe8   :  { %320 = vsyncpa [#allocation6], 1 }
  0xe9   :  { %321 = vsyncpa [#allocation9], 1 }
  0xea   :  { %322 = vsyncpa [#allocation12], 1 }

</bundles_post_ra>
